<compile_context>
chip_gen: v5e
topology: v5e:2x2
jax: 0.10.0
libtpu: 0.0.40
codegen_flags: <defaults>
</compile_context>

<pallas_src>
import jax
import jax.numpy as jnp
from jax.experimental import pallas as pl
from jax.experimental.pallas import tpu as pltpu


def _round_up(a, b):
    return -(-a // b) * b


def _vmem_capacity_bytes():
    try:
        info = pltpu.get_tpu_info()
        cap = getattr(info, "vmem_capacity_bytes", None)
        if cap:
            return int(cap)
    except Exception:
        pass
    return 64 * 1024 * 1024   # conservative default (v7x per-TC VMEM)


# ----------------------------- kernels ------------------------------------ #

def _nconv_kernel_fused(x_ref, bt_ref, o_ref):
    """4-D input path (A applied twice), refactored via B = A @ A (wrapper).

    x_ref : (V, TM)     x slice, lane dim TM = tile of C*L
    bt_ref: (K*W, V)    B with contraction dim (V) last, K*W pre-flattened
    o_ref : (K*W, TM)
    """
    o_ref[...] = jnp.dot(bt_ref[...], x_ref[...],
                         preferred_element_type=jnp.float32).astype(o_ref.dtype)


def _nconv_kernel_single(x_ref, at_ref, o_ref):
    """5-D input path (A applied once).

    x_ref : (K, V, TM)
    at_ref: (K, W, V)
    o_ref : (K, W, TM)
    """
    k_dim = at_ref.shape[0]
    # Unrolled over (small, static) K: each step is a clean 2-D MXU matmul.
    for k in range(k_dim):
        o_ref[k, :, :] = jnp.dot(
            at_ref[k, :, :], x_ref[k, :, :],
            preferred_element_type=jnp.float32).astype(o_ref.dtype)


# ----------------------------- wrapper ------------------------------------ #

def _apply_nconv(x, A, fused):
    K, N, V, W = A.shape
    isz = jnp.dtype(x.dtype).itemsize
    sub = {4: 8, 2: 16, 1: 32}.get(isz, 8)

    if fused:
        Nx, C, Vx, L = x.shape
        assert Nx == N and Vx == V, "shape mismatch between x and A"
        assert V == W, "4-D input (double application of A) requires V == W"
        # Algebraic refactor: applying A twice == applying B = A @ A once.
        B = jnp.einsum('knuv,knvw->knuw', A, A,
                       preferred_element_type=jnp.float32).astype(x.dtype)
        # (K, N, V, W) -> (N, K*W, V): contraction dim last, K*W pre-flattened.
        at = jnp.transpose(B, (1, 0, 3, 2)).reshape(N, K * W, V)
    else:
        Kx, Nx, C, Vx, L = x.shape
        assert Kx == K and Nx == N and Vx == V, "shape mismatch between x and A"
        at = jnp.transpose(A, (0, 1, 3, 2)).astype(x.dtype)   # (K, N, W, V)

    M = C * L
    M128 = _round_up(M, 128)          # lane-dense output stores need 128-multiples

    # ---------------- tile-size / VMEM budget (per TPU generation) ----------
    vmem_cap = _vmem_capacity_bytes()
    if vmem_cap >= 100 * 1024 * 1024:      # v5e/v6e (128 MiB VMEM): big tiles
        budget, tm_cap = 64 * 1024 * 1024, 2048
    else:                                  # v7x (64 MiB/TC): fit default 32 MiB
        budget, tm_cap = 28 * 1024 * 1024, 1024

    sub_v = _round_up(V, sub)
    sub_w = _round_up(W, sub)
    sub_kw = _round_up(K * W, sub)
    lane_v = _round_up(V, 128)

    def vmem_need(tm):
        # Padded tile footprints, double-buffered in/out blocks + live f32 result.
        if fused:
            x_blk = sub_v * tm * isz
            a_blk = sub_kw * lane_v * isz
            o_blk = sub_kw * tm * isz
            f32_live = sub_kw * tm * 4
        else:
            x_blk = K * sub_v * tm * isz
            a_blk = K * sub_w * lane_v * isz
            o_blk = K * sub_w * tm * isz
            f32_live = K * sub_w * tm * 4
        return 2 * (x_blk + a_blk + o_blk) + f32_live

    # Prefer a TM (multiple of 128) that exactly divides M128 (no pad waste).
    start = min(tm_cap, M128)
    candidates = [t for t in range(start, 127, -128) if M128 % t == 0]
    TM = next((t for t in candidates if vmem_need(t) <= budget), None)
    if TM is None:
        TM = max(128, start)
        while TM > 128 and vmem_need(TM) > budget:
            TM -= 128
    grid_m = pl.cdiv(M128, TM)
    Mp = grid_m * TM

    # ---------------- relayout x to (..., V, C*L) and pad lane dim ----------
    # TODO(synk): these transposes are pure layout plumbing; if the surrounding
    # model can produce/consume the (.., V, C*L) layout directly, drop them.
    if fused:
        xr = jnp.transpose(x, (0, 2, 1, 3)).reshape(N, V, M)
        if Mp != M:
            xr = jnp.pad(xr, ((0, 0), (0, 0), (0, Mp - M)))
        x_spec = pl.BlockSpec((None, V, TM), lambda n, m: (n, 0, m))
        a_spec = pl.BlockSpec((None, K * W, V), lambda n, m: (n, 0, 0))
        o_spec = pl.BlockSpec((None, K * W, TM), lambda n, m: (n, 0, m))
        out_shape = jax.ShapeDtypeStruct((N, K * W, Mp), x.dtype)
        kernel = _nconv_kernel_fused
    else:
        xr = jnp.transpose(x, (0, 1, 3, 2, 4)).reshape(K, N, V, M)
        if Mp != M:
            xr = jnp.pad(xr, ((0, 0), (0, 0), (0, 0), (0, Mp - M)))
        x_spec = pl.BlockSpec((K, None, V, TM), lambda n, m: (0, n, 0, m))
        a_spec = pl.BlockSpec((K, None, W, V), lambda n, m: (0, n, 0, 0))
        o_spec = pl.BlockSpec((K, None, W, TM), lambda n, m: (0, n, 0, m))
        out_shape = jax.ShapeDtypeStruct((K, N, W, Mp), x.dtype)
        kernel = _nconv_kernel_single

    est = vmem_need(TM)
    cp_kwargs = dict(dimension_semantics=("parallel", "parallel"))
    if est * 5 // 4 > 32 * 1024 * 1024:
        # Raise the scoped limit only when needed; never ask for full physical VMEM.
        cp_kwargs["vmem_limit_bytes"] = int(
            min(est * 5 // 4, vmem_cap - 16 * 1024 * 1024))

    cost = pl.CostEstimate(
        flops=2 * K * N * W * V * Mp,
        transcendentals=0,
        bytes_accessed=(xr.size + at.size + K * N * W * Mp) * isz,
    )

    out = pl.pallas_call(
        kernel,
        out_shape=out_shape,
        grid_spec=pltpu.PrefetchScalarGridSpec(
            num_scalar_prefetch=0,
            grid=(N, grid_m),           # N outer, M inner: A block reused across m
            in_specs=[x_spec, a_spec],
            out_specs=o_spec,
        ),
        compiler_params=pltpu.CompilerParams(**cp_kwargs),
        cost_estimate=cost,
    )(xr, at)

    # ---------------- back to the PyTorch output layout (K, N, C, W, L) -----
    if fused:
        out = out[:, :, :M].reshape(N, K, W, C, L)
        return jnp.transpose(out, (1, 0, 3, 2, 4))
    out = out[..., :M].reshape(K, N, W, C, L)
    return jnp.transpose(out, (0, 1, 3, 2, 4))


def nconv_forward(x, A):
    """Exact port of model_utils.nconv.forward (two consecutive `if`s)."""
    if x.ndim == 4:
        return _apply_nconv(x, A, fused=True)    # A applied twice (as B = A @ A)
    if x.ndim == 5:
        return _apply_nconv(x, A, fused=False)   # A applied once
    raise ValueError("x must be 4-D or 5-D")
    # .contiguous() is a no-op in JAX (arrays are already dense/contiguous).


# ------------------------------ test -------------------------------------- #

if __name__ == "__main__":
    # Small deterministic shapes. V == W so the double-application path
    # (4-D input feeds both einsums) is shape-valid, as in the original code.
    # C * L = 128 -> lane-dense output stores, single M tile.
    K, N, C, V, W, L = 3, 2, 8, 8, 8, 16
    key = jax.random.PRNGKey(0)
    kx, ka = jax.random.split(key)
    x = jax.random.normal(kx, (N, C, V, L), dtype=jnp.float32)
    A = jax.random.normal(ka, (K, N, V, W), dtype=jnp.float32)

    # Reference (same double-application semantics as the PyTorch module).
    ref1 = jnp.einsum('ncvl,knvw->kncwl', x, A)          # first application (5-D)
    ref = jnp.einsum('kncvl,knvw->kncwl', ref1, A)       # second application
    ref = jax.block_until_ready(ref)

    # 4-D path (double application, refactored as B = A @ A inside one kernel call).
    out4 = jax.block_until_ready(nconv_forward(x, A))
    assert out4.shape == (K, N, C, W, L)
    assert jnp.allclose(out4, ref, atol=1e-3, rtol=1e-3)

    # 5-D path (single application) — feed the reference intermediate.
    out5 = jax.block_until_ready(nconv_forward(ref1, A))
    assert out5.shape == (K, N, C, W, L)
    assert jnp.allclose(out5, ref, atol=1e-3, rtol=1e-3)

    print("KERNEL_OK")
</pallas_src>

<mosaic_0001>
module attributes {stable_mosaic.version = 11 : i64} {
  func.func @_nconv_kernel_fused(%arg0: i32, %arg1: i32, %arg2: memref<1x8x128xf32, #tpu.memory_space<vmem>>, %arg3: memref<1x24x8xf32, #tpu.memory_space<vmem>>, %arg4: memref<1x24x128xf32, #tpu.memory_space<vmem>>) attributes {dimension_semantics = [#tpu.dimension_semantics<parallel>, #tpu.dimension_semantics<parallel>], iteration_bounds = array<i64: 2, 1>, scalar_prefetch = 0 : i64, scratch_operands = 0 : i64, tpu.core_type = #tpu.core_type<tc>, window_params = [{transform_indices = @transform_0, window_bounds = array<i64: 1, 8, 128>}, {transform_indices = @transform_1, window_bounds = array<i64: 1, 24, 8>}, {transform_indices = @transform_2, window_bounds = array<i64: 1, 24, 128>}]} {
    %c0 = arith.constant 0 : index
    %c0_0 = arith.constant 0 : index
    %c0_1 = arith.constant 0 : index
    %0 = vector.load %arg3[%c0, %c0_0, %c0_1] : memref<1x24x8xf32, #tpu.memory_space<vmem>>, vector<1x24x8xf32>
    %1 = vector.shape_cast %0 : vector<1x24x8xf32> to vector<24x8xf32>
    %c0_2 = arith.constant 0 : index
    %c0_3 = arith.constant 0 : index
    %c0_4 = arith.constant 0 : index
    %2 = vector.load %arg2[%c0_2, %c0_3, %c0_4] : memref<1x8x128xf32, #tpu.memory_space<vmem>>, vector<1x8x128xf32>
    %3 = vector.shape_cast %2 : vector<1x8x128xf32> to vector<8x128xf32>
    %cst = arith.constant dense<0.000000e+00> : vector<24x128xf32>
    %4 = tpu.matmul %1, %3, %cst {dimension_numbers = #tpu.dot_dimension_numbers<[1], [0], [0], [1], [0, 0, 1, 1], [], []>} : vector<24x8xf32>, vector<8x128xf32>, vector<24x128xf32> -> vector<24x128xf32>
    %c0_5 = arith.constant 0 : index
    %c0_6 = arith.constant 0 : index
    %c0_7 = arith.constant 0 : index
    %5 = vector.load %arg4[%c0_5, %c0_6, %c0_7] : memref<1x24x128xf32, #tpu.memory_space<vmem>>, vector<1x24x128xf32>
    %6 = vector.shape_cast %5 : vector<1x24x128xf32> to vector<24x128xf32>
    %7 = vector.shape_cast %4 : vector<24x128xf32> to vector<1x24x128xf32>
    tpu.vector_store %arg4[%c0_5, %c0_6, %c0_7], %7 {strides = array<i32>} : memref<1x24x128xf32, #tpu.memory_space<vmem>>, vector<1x24x128xf32>,
    return
  }
  func.func @transform_0(%arg0: i32, %arg1: i32) -> (i32, i32, i32) {
    %c0_i32 = arith.constant 0 : i32
    %c0_i32_0 = arith.constant 0 : i32
    return %arg0, %c0_i32, %arg1 : i32, i32, i32
  }
  func.func @transform_1(%arg0: i32, %arg1: i32) -> (i32, i32, i32) {
    %c0_i32 = arith.constant 0 : i32
    %c0_i32_0 = arith.constant 0 : i32
    %c0_i32_1 = arith.constant 0 : i32
    return %arg0, %c0_i32, %c0_i32_0 : i32, i32, i32
  }
  func.func @transform_2(%arg0: i32, %arg1: i32) -> (i32, i32, i32) {
    %c0_i32 = arith.constant 0 : i32
    %c0_i32_0 = arith.constant 0 : i32
    return %arg0, %c0_i32, %arg1 : i32, i32, i32
  }
}

</mosaic_0001>

<bundles_post_ra>
// kernel: tpu_custom_call.1
= control target key start
LH: loop header
LB: loop body
LE: loop exit
PB: predicated region body
PF: predicated region fallthrough
CT: control target
= control target key end

     0   :  { %7 = vsyncpa [#allocation3], 0  ;;  %s603_s0 = inlined_call_operand.vmem [shape: f32[2,8,128], index: 0, kind: input, shape index: {}]   ;;  %s604_s1 = inlined_call_operand.vmem [shape: f32[2,24,8], index: 1, kind: input, shape index: {}]   ;;  %s605_s2 = inlined_call_operand.hbm [shape: f32[2,24,128], index: 2, kind: output, shape index: {}]  }
   0x1   :  { %9 = vsyncpa [#allocation3 + $0x1], 0  ;;  %s503_s9 = smov 0   ;;  %s505_s10 = smov 0  }
   0x2   :  { %s507_s11 = smov 0   ;;  %s509_s12 = smov 0  }
   0x3   :  { %s511_s13 = smov 0   ;;  %s513_s14 = smov 0  }
   0x4 LB: > { %s331_s15 = sadd.s32 4294967295, %s484_s14   ;;  %s332_s16 = sadd.s32 4294967294, %s484_s14   ;;  %s484_s14 = sphi %s513_s14, %s15_s14   ;;  %s480_s13 = sphi %s511_s13, %s612_s13   ;;  %s476_s12 = sphi %s509_s12, %s611_s12   ;;  %s472_s11 = sphi %s507_s11, %s610_s11   ;;  %s468_s10 = sphi %s505_s10, %s609_s10   ;;  %s464_s9 = sphi %s503_s9, %s608_s9  }
   0x5   : > { %s27_s17 = sadd.s32 1, %s480_s13  ;;  %s90_s18 = sadd.s32 1, %s472_s11 }
   0x6   : > { %p29_p0 = scmp.ge.s32.totalorder %s27_s17, 2  ;;  %p100_p1 = scmp.ne.s32.totalorder %s472_s11, %s468_s10 }
   0x7   : > { %p101_p2 = scmp.eq.s32.totalorder %s331_s15, 1  ;;  %p106_p3 = scmp.ne.s32.totalorder %s468_s10, %s464_s9 }
   0x8   : > { %s614_s17 = smov (%p29_p0, %s27_s17), 0  ;;  %p107_p5 = scmp.eq.s32.totalorder %s332_s16, 1 }
   0x9   : > { %p543_p4 = por %p101_p2, %p100_p1  ;;  %s85_s20 = ssub.s32 %s480_s13, %s614_s17 }
   0xa   : > { %p335_p6 = scmp.ge.s32.totalorder %s484_s14, 1  ;;  %p88_p7 = scmp.eq.s32.totalorder %s85_s20, 0 }
   0xb   : > { %p550_p8 = por %p107_p5, %p106_p3  ;;  %p143_p9 = scmp.lt.s32.totalorder %s484_s14, 3 }
   0xc   : > { %s556_s22 = scalar_select %p88_p7, %s472_s11, %s90_s18  }
   0xd   : > { %p144_p10 = pnand %p335_p6, %p143_p9 }
   0xe   : > { %p172_p11 = scmp.lt.s32.totalorder (!%p144_p10), %s476_s12, 1  ;;  %s169_s4 = sand.u32 (!%p144_p10), 1, %s468_s10  }
   0xf   : > { %147 = sbr.rel (%p144_p10) target bundleno = 162 (0xa2), region = 28  ;;  %s426_s27 = scalar_lea.hbm (!%p144_p10), %s605_s2, 48 }
  0x10   : > { %s346_s5 = smul.u32 (!%p144_p10), 24, %s169_s4 }
  0x11   : > { %s348_s6 = smul.u32 (!%p144_p10), 24, %s476_s12 }
  0x12   : > { %s171_s16 = scalar_lea.vmem (!%p144_p10), [#allocation2], %s346_s5 }
  0x13   : > { %s240_s15 = scalar_lea.hbm (!%p144_p10), %s605_s2, %s348_s6  ;;  %s241_s18 = sshll.u32 (!%p144_p10), %s171_s16, 4  ;;  %s242_s18 = int_to_ptr.vmem [resolvable:$true] %s241_s18 }
  0x14   : > { %s173_s23 = scalar_select %p172_p11, %s476_s12, 1  ;;  %vm188_vm0 = vcmask 64512  }
  0x15   : > { %s243_s20 = sshll.u32 %s240_s15, 4  ;;  %s244_s20 = int_to_ptr.hbm [resolvable:$true] %s243_s20 }
  0x16   : > { %s336_s24 = sshll.u32 %s173_s23, 3  ;;  %s347_s25 = smul.u32 24, %s173_s23 }
  0x17   : > { %s178_s28 = scalar_lea.vmem %s603_s0, %s336_s24  ;;  %s228_s23 = scalar_lea.sflag [#allocation3], %s169_s4 }
  0x18   : > { %v187_v0 = vld [vmem:[%s178_s28] sm:$0xff]  ;;  %s183_s3 = scalar_lea.vmem %s604_s1, %s347_s25  ;;  %s420_s24 = sshra.s32 %s244_s20, 4  ;;  %s421_s24 = int_to_ptr.hbm [resolvable:$true] %s420_s24 }
  0x19   : > { %345 = vmatpush.msra.mxu2 %v187_v0  ;;  %v186_v1 = vld [vmem:[%s183_s3 + $0x10] sm:$0xff]  ;;  %213 = vmatpush.msra.mxu0 %v187_v0  ;;  %v184_v2 = vld [vmem:[%s183_s3] sm:$0xff]  ;;  %v185_v3 = vld [vmem:[%s183_s3 + $0x8] sm:$0xff]  ;;  %s422_s12 = scalar_lea.hbm %s421_s24, 24  ;;  %p427_p1 = scmp.lt.s32.totalorder %s421_s24, %s605_s2 }
  0x1a   : > { %340 = vmatmul.msk.f32.vlgmr.msra.gmra.mxu2 %vm188_vm0, %v186_v1  ;;  %344 = vmatpush.msra.mxu1 %v187_v0  ;;  %p423_p12 = scmp.ne.s32.totalorder %s421_s24, %s422_s12  ;;  %p428_p2 = scmp.lt.s32.totalorder %s426_s27, %s422_s12 }
  0x1b   : > { %338 = vmatmul.msk.f32.vlgmr.msra.gmra.mxu0 %vm188_vm0, %v184_v2  ;;  %339 = vmatmul.msk.f32.vlgmr.msra.gmra.mxu1 %vm188_vm0, %v185_v3 }
  0x1c   : > { %p424_p13 = pnand %p423_p12, %p543_p4  ;;  %p429_p3 = por %p428_p2, %p427_p1 }
  0x1e   : > { %p425_p0 = pneg %p424_p13 }
  0x20   : > { %p430_p5 = pnand %p429_p3, %p425_p0 }
  0x98   : > { %v215_v4 = vpop.f32.mrf.mxu0  ;;  %v218_v5 = vpop.f32.mrf.mxu1 }
  0x99   : > { %224 = vst [vmem:[%s171_s16] sm:$0xff] %v215_v4 }
  0x9a   : > { %225 = vst [vmem:[%s171_s16 + $0x8] sm:$0xff] %v218_v5 }
  0x9d   : > { %v221_v6 = vpop.f32.mrf.mxu2 }
  0x9e   : > { %226 = vst [vmem:[%s171_s16 + $0x10] sm:$0xff] %v221_v6 }
  0x9f   : > { %433 = shalt.err (!%p430_p5)
}
  0xa0   : > { %s486_s30 = smov 128   ;;  %s487_s3 = smov 8  }
  0xa1   : > { %349 = dma.vmem_to_hbm [thread:$0]  (%p543_p4), %s242_s18, 384, %s244_s20, %s228_s23, %s486_s30, %s486_s30, %s487_s3  }
  0xa2 PF: > { %p355_p6 = scmp.ge.s32.totalorder %s484_s14, 2  ;;  %s258_s4 = sand.u32 1, %s464_s9  }
  0xa3   : > { %s259_s5 = scalar_lea.sflag [#allocation3], %s258_s4 }
  0xa4   : > { %p352_p7 = pnand %p355_p6, %p550_p8 }
  0xa6   : > { %p353_p9 = pneg %p352_p7 }
  0xa8   : > { %459 = dma.done.wait (%p353_p9), %s259_s5, 384  }
  0xa9   : > { %461 = vsyncadd (%p353_p9), %s259_s5, 4294966912  ;;  %s15_s14 = sadd.s32 1, %s484_s14   ;;  %s608_s9 = smov %s468_s10 }
  0xaa   : > { %p12_p10 = scmp.ge.s32.totalorder %s15_s14, 4   ;;  %s609_s10 = smov %s472_s11 }
  0xab   : > { %s610_s11 = smov %s556_s22  ;;  %s611_s12 = smov %s480_s13 }
  0xac   : > { %s612_s13 = smov %s614_s17  ;;  %14 = sbr.rel (!%p12_p10) target bundleno = 4 (0x4), region = 66 }
  0xb1   :  { %265 = vsyncpa [#allocation3], 1 }
  0xb2   :  { %267 = vsyncpa [#allocation3 + $0x1], 1 }

</bundles_post_ra>
